<compile_context>
chip_gen: v7x
topology: tpu7x:2x2x1
jax: 0.10.0
libtpu: 0.0.40
codegen_flags: <defaults>
</compile_context>

<pallas_src>
import jax
import jax.numpy as jnp
from jax import lax
from jax.experimental import pallas as pl
from jax.experimental.pallas import tpu as pltpu


_NEG_BIG = -9e15  # same mask value as the PyTorch module


def _elu(x):
    # TODO(synk): jnp.expm1 is slightly more accurate near 0; exp(x)-1 kept
    # because its Mosaic lowering is known-good.
    return jnp.where(x > 0, x, jnp.exp(x) - 1.0)


# ----------------------------------------------------------------------------
# Attention kernel: one GAT bank (all H heads).  Projections are precomputed
# and passed in; the kernel only does masked softmax + aggregation + ELUs.
# Grid iterates over independent query-row tiles ("parallel").
# ----------------------------------------------------------------------------
def _make_attn_kernel(H, nhid, alpha, mxu_dtype, with_att):
    def kernel(whall_ref, wh1_ref, wh2t_ref, adj_ref, out_ref, *maybe_att):
        att_ref = maybe_att[0] if with_att else None

        # Hoisted out of the head loop: one int8->mask compare per tile.
        mask = adj_ref[...].astype(jnp.int32) > 0        # (tq, N)
        wh1 = wh1_ref[...]                               # (tq, H)  f32
        wh2t = wh2t_ref[...]                             # (H, N)   f32

        alpha_f = jnp.float32(alpha)
        neg_big = jnp.float32(_NEG_BIG)

        outs = []
        for hd in range(H):
            # e = LeakyReLU(Wh@a1 + (Wh@a2)^T)           # (tq, N)
            e = wh1[:, hd:hd + 1] + wh2t[hd:hd + 1, :]
            e = jnp.where(e > 0, e, alpha_f * e)

            # masked softmax over keys (dim=1)
            logits = jnp.where(mask, e, neg_big)
            m = jnp.max(logits, axis=1, keepdims=True)
            p = jnp.exp(logits - m)
            s = jnp.sum(p, axis=1, keepdims=True)
            # NOTE: approx reciprocal (EUP slot); rows sum to 1 only to ~1e-3.
            att = p * pl.reciprocal(s, approx=True)      # (tq, N)

            # h' = att @ Wh_h (bf16 inputs, f32 accumulation).  A batched
            # dot_general over heads lowers to the same per-head MXU passes,
            # so the unrolled Python loop (H small) is equivalent.
            wh_h = whall_ref[:, hd * nhid:(hd + 1) * nhid]          # (N, nhid)
            h_prime = jnp.dot(att.astype(mxu_dtype), wh_h,
                              preferred_element_type=jnp.float32)   # (tq, nhid)
            # Fuse per-layer ELU (concat=True) and the post-concat F.elu.
            outs.append(_elu(_elu(h_prime)))

            if with_att:
                att_ref[hd] = att.astype(att_ref.dtype)

        # Single lane-dense store per grid step (no per-head 8-lane stores).
        out_ref[...] = jnp.concatenate(outs, axis=1).astype(out_ref.dtype)

    return kernel


# ----------------------------------------------------------------------------
# VMEM-aware tile-size / vmem-limit selection.
# ----------------------------------------------------------------------------
def _vmem_capacity_bytes():
    try:
        return int(pltpu.get_tpu_info().vmem_capacity_bytes)
    except Exception:
        return 64 * 1024 * 1024   # conservative fallback (v7x-safe)


def _attn_block_bytes(N, H, nhid, tq, with_att, mxu_bytes, att_bytes):
    resident = 2 * (N * H * nhid * mxu_bytes) + 2 * (H * N * 4)   # wh_all, wh2t
    per_tile = 2 * (tq * N * 1                    # adj (int8), double-buffered
                    + tq * H * 4                  # wh1 tile
                    + tq * H * nhid * 4           # out tile
                    + (H * tq * N * att_bytes if with_att else 0))
    interm = 6 * tq * N * 4                       # mask/e/logits/p/att + slack
    return resident + per_tile + interm


def _pick_tq(N, H, nhid, with_att, mxu_bytes, att_bytes, vmem_budget):
    if N <= 1024:
        return N
    for t in (1024, 512, 256, 128, 64, 32, 16, 8):
        if N % t == 0 and _attn_block_bytes(
                N, H, nhid, t, with_att, mxu_bytes, att_bytes) <= vmem_budget:
            return t
    # TODO(synk): key-axis tiling (flash-style) instead of tiny query tiles.
    for t in (8, 16, 32, 64, 128):
        if N % t == 0:
            return t
    return N


# ----------------------------------------------------------------------------
# One GAT bank (all heads).  Returns (ELU'd concat output (N, H*nhid),
# attention stack (H, N, N) in att_dtype or None).
# ----------------------------------------------------------------------------
def gat_bank(h, adj_i8, W_ext, WA2T, *, H, nhid, alpha,
             mxu_dtype=jnp.bfloat16, with_att=True,
             att_dtype=jnp.bfloat16, tq=None):
    N, F = h.shape
    mxu_bytes = jnp.dtype(mxu_dtype).itemsize
    att_bytes = jnp.dtype(att_dtype).itemsize

    # --- Projection, computed ONCE per bank (hoisted out of the kernel). ----
    # W_ext = [W_0|...|W_{H-1} | W_0@a1_0|...|W_{H-1}@a1_{H-1}], WA2T=(W@a2)^T
    hm = h.astype(mxu_dtype)
    wh_ext = jnp.dot(hm, W_ext.astype(mxu_dtype),
                     preferred_element_type=jnp.float32)        # (N, H*nhid+H)
    wh_all = wh_ext[:, :H * nhid].astype(mxu_dtype)             # keys, bf16
    wh1 = wh_ext[:, H * nhid:]                                  # (N, H) f32
    wh2t = jnp.dot(WA2T.astype(mxu_dtype), hm.T,
                   preferred_element_type=jnp.float32)          # (H, N) f32

    vmem_cap = _vmem_capacity_bytes()
    vmem_budget = int(0.8 * vmem_cap)   # ~100MiB on 128MiB parts, ~52MiB on v7x
    if tq is None:
        tq = _pick_tq(N, H, nhid, with_att, mxu_bytes, att_bytes, vmem_budget)
    assert N % tq == 0
    grid = (N // tq,)

    kernel = _make_attn_kernel(H, nhid, float(alpha), mxu_dtype, with_att)

    out_shapes = [jax.ShapeDtypeStruct((N, H * nhid), jnp.float32)]
    out_specs = [pl.BlockSpec((tq, H * nhid), lambda i: (i, 0))]
    if with_att:
        out_shapes.append(jax.ShapeDtypeStruct((H, N, N), att_dtype))
        out_specs.append(pl.BlockSpec((H, tq, N), lambda i: (0, i, 0)))

    block_bytes = _attn_block_bytes(N, H, nhid, tq, with_att,
                                    mxu_bytes, att_bytes)
    vmem_limit = int(min(vmem_budget, max(block_bytes, 16 * 1024 * 1024)))

    in_specs = [
        pl.BlockSpec((N, H * nhid), lambda i: (0, 0)),   # wh_all (all keys)
        pl.BlockSpec((tq, H), lambda i: (i, 0)),         # wh1 query tile
        pl.BlockSpec((H, N), lambda i: (0, 0)),          # wh2t (all keys)
        pl.BlockSpec((tq, N), lambda i: (i, 0)),         # adj int8 row tile
    ]

    res = pl.pallas_call(
        kernel,
        out_shape=tuple(out_shapes),
        grid=grid,
        in_specs=in_specs,
        out_specs=tuple(out_specs),
        compiler_params=pltpu.CompilerParams(
            dimension_semantics=("parallel",),           # row tiles independent
            vmem_limit_bytes=vmem_limit),
    )(wh_all, wh1, wh2t, adj_i8)

    if with_att:
        return res[0], res[1]
    return res[0], None


# ----------------------------------------------------------------------------
# Host-side weight preparation: fold a1/a2 into the weight matrices.
# ----------------------------------------------------------------------------
def prep_bank_params(W, a):
    """W: (H, F, nhid), a: (H, 2*nhid, 1) ->
       W_ext: (F, H*nhid + H) = [concat_h W_h | W_h @ a_h[:nhid]]
       WA2T : (H, F)          = rows (W_h @ a_h[nhid:])^T
    """
    H, F, nhid = W.shape
    a1 = a[:, :nhid, 0]                                        # (H, nhid)
    a2 = a[:, nhid:, 0]                                        # (H, nhid)
    W_all = jnp.transpose(W, (1, 0, 2)).reshape(F, H * nhid)   # (F, H*nhid)
    WA1 = jnp.einsum('hfk,hk->fh', W, a1,
                     precision=lax.Precision.HIGHEST)          # (F, H)
    WA2T = jnp.einsum('hfk,hk->hf', W, a2,
                      precision=lax.Precision.HIGHEST)         # (H, F)
    return jnp.concatenate([W_all, WA1], axis=1), WA2T


# ----------------------------------------------------------------------------
# Full GAT forward (inference).
# ----------------------------------------------------------------------------
def gat_forward(x, adj, params, *, alpha, mxu_dtype=jnp.bfloat16,
                with_att=True, att_dtype=jnp.bfloat16, tq=None):
    (W1, a1), (W2, a2) = params
    H, _, nhid = W1.shape
    We1, Wa2t1 = prep_bank_params(W1, a1)
    We2, Wa2t2 = prep_bank_params(W2, a2)

    # The kernel only needs `adj > 0`: ship it as int8 (4x less N^2 traffic),
    # shared by both banks.
    adj_i8 = (adj > 0).astype(jnp.int8)

    x1, att1 = gat_bank(x, adj_i8, We1, Wa2t1, H=H, nhid=nhid, alpha=alpha,
                        mxu_dtype=mxu_dtype, with_att=with_att,
                        att_dtype=att_dtype, tq=tq)
    x2, att2 = gat_bank(x1, adj_i8, We2, Wa2t2, H=H, nhid=nhid, alpha=alpha,
                        mxu_dtype=mxu_dtype, with_att=with_att,
                        att_dtype=att_dtype, tq=tq)
    # TODO(synk): fuse both banks into one pallas_call for tiny graphs.

    if with_att:
        atts = [att1[i] for i in range(H)] + [att2[i] for i in range(H)]
    else:
        atts = []
    return x2, atts


# ----------------------------------------------------------------------------
# References.
# ----------------------------------------------------------------------------
def _ref_head_torch(h, adj, W, a, alpha):
    """Exact PyTorch op order (per head, f32)."""
    nhid = W.shape[1]
    Wh = h @ W
    e = (Wh @ a[:nhid, :]) + (Wh @ a[nhid:, :]).T
    e = jnp.where(e > 0, e, alpha * e)
    att = jnp.where(adj > 0, e, jnp.float32(_NEG_BIG))
    att = jax.nn.softmax(att, axis=1)
    return _elu(att @ Wh), att


def _ref_forward_torch(x, adj, params, alpha):
    (W1, a1), (W2, a2) = params
    H = W1.shape[0]
    outs1 = [_ref_head_torch(x, adj, W1[i], a1[i], alpha) for i in range(H)]
    x1 = _elu(jnp.concatenate([o for o, _ in outs1], axis=1))
    outs2 = [_ref_head_torch(x1, adj, W2[i], a2[i], alpha) for i in range(H)]
    x2 = _elu(jnp.concatenate([o for o, _ in outs2], axis=1))
    return x2, [a for _, a in outs1] + [a for _, a in outs2]


def _ref_bank_mirror(x, adj, W_ext, WA2T, H, nhid, alpha, mxu_dtype):
    """Plain-JAX mirror of the kernel math (same folds, same dtype casts)."""
    xm = x.astype(mxu_dtype)
    wh_ext = jnp.dot(xm, W_ext.astype(mxu_dtype),
                     preferred_element_type=jnp.float32)
    wh_all = wh_ext[:, :H * nhid].astype(mxu_dtype)
    wh1 = wh_ext[:, H * nhid:]
    wh2t = jnp.dot(WA2T.astype(mxu_dtype), xm.T,
                   preferred_element_type=jnp.float32)
    mask = adj > 0
    outs, atts = [], []
    for hd in range(H):
        e = wh1[:, hd:hd + 1] + wh2t[hd:hd + 1, :]
        e = jnp.where(e > 0, e, alpha * e)
        logits = jnp.where(mask, e, jnp.float32(_NEG_BIG))
        m = jnp.max(logits, axis=1, keepdims=True)
        p = jnp.exp(logits - m)
        att = p / jnp.sum(p, axis=1, keepdims=True)
        hp = jnp.dot(att.astype(mxu_dtype), wh_all[:, hd * nhid:(hd + 1) * nhid],
                     preferred_element_type=jnp.float32)
        outs.append(_elu(_elu(hp)))
        atts.append(att)
    return jnp.concatenate(outs, axis=1), jnp.stack(atts)


def _ref_forward_mirror(x, adj, params, alpha, mxu_dtype):
    (W1, a1), (W2, a2) = params
    H, _, nhid = W1.shape
    We1, Wa2t1 = prep_bank_params(W1, a1)
    We2, Wa2t2 = prep_bank_params(W2, a2)
    x1, att1 = _ref_bank_mirror(x, adj, We1, Wa2t1, H, nhid, alpha, mxu_dtype)
    x2, att2 = _ref_bank_mirror(x1, adj, We2, Wa2t2, H, nhid, alpha, mxu_dtype)
    return x2, [att1[i] for i in range(H)] + [att2[i] for i in range(H)]


# ----------------------------------------------------------------------------
# Deterministic parameter init (xavier_uniform, gain=1.414).
# ----------------------------------------------------------------------------
def _xavier_uniform(key, shape, gain):
    fan_in, fan_out = shape[-2], shape[-1]
    bound = gain * jnp.sqrt(6.0 / (fan_in + fan_out))
    return jax.random.uniform(key, shape, jnp.float32, -bound, bound)


def make_bank_params(key, nheads, nfeat, nhid, gain=1.414):
    kW, ka = jax.random.split(key)
    W = _xavier_uniform(kW, (nheads, nfeat, nhid), gain)     # (H, F, nhid)
    a = _xavier_uniform(ka, (nheads, 2 * nhid, 1), gain)     # (H, 2*nhid, 1)
    return W, a


if __name__ == "__main__":
    # GAT requires nfeat == nheads * nhid for the second bank to type-check.
    N, nheads, nhid = 8, 4, 8
    nfeat = nheads * nhid            # 32
    alpha = 0.2

    key = jax.random.PRNGKey(0)
    kx, kadj, k1, k2 = jax.random.split(key, 4)

    x = jax.random.normal(kx, (N, nfeat), jnp.float32)
    adj = (jax.random.uniform(kadj, (N, N)) > 0.5).astype(jnp.float32)
    adj = jnp.maximum(adj, jnp.eye(N, dtype=jnp.float32))    # self loops

    params = (make_bank_params(k1, nheads, nfeat, nhid),
              make_bank_params(k2, nheads, nfeat, nhid))

    # Primary config: bf16 MXU inputs, f32 accumulation, bf16 attention output.
    out_bf, atts_bf = gat_forward(x, adj, params, alpha=alpha,
                                  mxu_dtype=jnp.bfloat16)
    out_bf = jax.block_until_ready(out_bf)
    atts_bf = [jax.block_until_ready(a) for a in atts_bf]
    assert out_bf.shape == (N, nheads * nhid) and len(atts_bf) == 2 * nheads

    # Portable f32-MXU path also compiles/runs.
    out_f32, _ = gat_forward(x, adj, params, alpha=alpha,
                             mxu_dtype=jnp.float32)
    out_f32 = jax.block_until_ready(out_f32)

    # Attention-less variant (perf path) matches.
    out_noatt, _ = gat_forward(x, adj, params, alpha=alpha,
                               mxu_dtype=jnp.bfloat16, with_att=False)
    out_noatt = jax.block_until_ready(out_noatt)
    assert jnp.allclose(out_noatt, out_bf, rtol=1e-3, atol=1e-3)

    # 1) Tight check: kernel vs an op-order-identical plain-JAX mirror
    #    (same folded weights, same bf16 casts, f32 accumulation).
    mir_out, mir_atts = _ref_forward_mirror(x, adj, params, alpha, jnp.bfloat16)
    assert jnp.allclose(out_bf, mir_out, rtol=5e-2, atol=5e-2)
    for a, ra in zip(atts_bf, mir_atts):
        assert jnp.allclose(a, ra, rtol=5e-2, atol=5e-2)

    # 2) Semantic check vs the exact PyTorch-op-order f32 reference
    #    (looser tolerance: MXU inputs are bf16, att stored in bf16).
    ref_out, ref_atts = _ref_forward_torch(x, adj, params, alpha)
    assert jnp.allclose(out_bf, ref_out, rtol=0.25, atol=0.2)
    for a, ra in zip(atts_bf, ref_atts):
        assert jnp.allclose(a, ra, rtol=0.25, atol=0.2)
    assert jnp.allclose(out_f32, ref_out, rtol=0.25, atol=0.2)

    print("KERNEL_OK")
</pallas_src>

<mosaic_0001>
module attributes {stable_mosaic.version = 11 : i64} {
  func.func @kernel(%arg0: i32, %arg1: memref<8x32xbf16, #tpu.memory_space<vmem>>, %arg2: memref<8x4xf32, #tpu.memory_space<vmem>>, %arg3: memref<4x8xf32, #tpu.memory_space<vmem>>, %arg4: memref<8x8xi8, #tpu.memory_space<vmem>>, %arg5: memref<8x32xf32, #tpu.memory_space<vmem>>, %arg6: memref<4x8x8xbf16, #tpu.memory_space<vmem>>) attributes {dimension_semantics = [#tpu.dimension_semantics<parallel>], iteration_bounds = array<i64: 1>, scalar_prefetch = 0 : i64, scratch_operands = 0 : i64, tpu.core_type = #tpu.core_type<tc>, window_params = [{pipeline_mode = #tpu.pipeline_mode<synchronous>, transform_indices = @transform_0, window_bounds = array<i64: 8, 32>}, {transform_indices = @transform_1, window_bounds = array<i64: 8, 4>}, {pipeline_mode = #tpu.pipeline_mode<synchronous>, transform_indices = @transform_2, window_bounds = array<i64: 4, 8>}, {transform_indices = @transform_3, window_bounds = array<i64: 8, 8>}, {transform_indices = @transform_4, window_bounds = array<i64: 8, 32>}, {transform_indices = @transform_5, window_bounds = array<i64: 4, 8, 8>}]} {
    %c0 = arith.constant 0 : index
    %c0_0 = arith.constant 0 : index
    %0 = vector.load %arg4[%c0, %c0_0] : memref<8x8xi8, #tpu.memory_space<vmem>>, vector<8x8xi8>
    %1 = arith.extsi %0 : vector<8x8xi8> to vector<8x8xi32>
    %c0_i32 = arith.constant 0 : i32
    %2 = vector.broadcast %c0_i32 : i32 to vector<8x8xi32>
    %3 = arith.cmpi sgt, %1, %2 : vector<8x8xi32>
    %c0_1 = arith.constant 0 : index
    %c0_2 = arith.constant 0 : index
    %4 = vector.load %arg2[%c0_1, %c0_2] : memref<8x4xf32, #tpu.memory_space<vmem>>, vector<8x4xf32>
    %c0_3 = arith.constant 0 : index
    %c0_4 = arith.constant 0 : index
    %5 = vector.load %arg3[%c0_3, %c0_4] : memref<4x8xf32, #tpu.memory_space<vmem>>, vector<4x8xf32>
    %6 = vector.extract_strided_slice %4 {offsets = [0, 0], sizes = [8, 1], strides = [1, 1]} : vector<8x4xf32> to vector<8x1xf32>
    %7 = vector.extract_strided_slice %5 {offsets = [0, 0], sizes = [1, 8], strides = [1, 1]} : vector<4x8xf32> to vector<1x8xf32>
    %8 = vector.broadcast %6 : vector<8x1xf32> to vector<8x8xf32>
    %9 = vector.broadcast %7 : vector<1x8xf32> to vector<8x8xf32>
    %10 = arith.addf %8, %9 : vector<8x8xf32>
    %cst = arith.constant 0.000000e+00 : f32
    %11 = vector.broadcast %cst : f32 to vector<8x8xf32>
    %12 = arith.cmpf ogt, %10, %11 : vector<8x8xf32>
    %cst_5 = arith.constant 2.000000e-01 : f32
    %13 = vector.broadcast %cst_5 : f32 to vector<8x8xf32>
    %14 = arith.mulf %13, %10 : vector<8x8xf32>
    %15 = arith.select %12, %10, %14 : vector<8x8xi1>, vector<8x8xf32>
    %cst_6 = arith.constant -9.000000e+15 : f32
    %16 = vector.broadcast %cst_6 : f32 to vector<8x8xf32>
    %17 = arith.select %3, %15, %16 : vector<8x8xi1>, vector<8x8xf32>
    %cst_7 = arith.constant dense<0xFF800000> : vector<8xf32>
    %18 = vector.multi_reduction <maximumf>, %17, %cst_7 [1] : vector<8x8xf32> to vector<8xf32>
    %19 = vector.shape_cast %18 : vector<8xf32> to vector<8x1xf32>
    %20 = vector.broadcast %19 : vector<8x1xf32> to vector<8x8xf32>
    %21 = arith.subf %17, %20 : vector<8x8xf32>
    %22 = math.exp %21 : vector<8x8xf32>
    %cst_8 = arith.constant dense<0.000000e+00> : vector<8xf32>
    %23 = vector.multi_reduction <add>, %22, %cst_8 [1] : vector<8x8xf32> to vector<8xf32>
    %24 = vector.shape_cast %23 : vector<8xf32> to vector<8x1xf32>
    %25 = tpu.reciprocal %24 {approx = true} : vector<8x1xf32> -> vector<8x1xf32>
    %26 = vector.broadcast %25 : vector<8x1xf32> to vector<8x8xf32>
    %27 = arith.mulf %22, %26 : vector<8x8xf32>
    %c0_9 = arith.constant 0 : index
    %c0_10 = arith.constant 0 : index
    %28 = vector.load %arg1[%c0_9, %c0_10] : memref<8x32xbf16, #tpu.memory_space<vmem>>, vector<8x8xbf16>
    %29 = arith.truncf %27 : vector<8x8xf32> to vector<8x8xbf16>
    %cst_11 = arith.constant dense<0.000000e+00> : vector<8x8xf32>
    %30 = tpu.matmul %29, %28, %cst_11 {dimension_numbers = #tpu.dot_dimension_numbers<[1], [0], [0], [1], [0, 0, 1, 1], [], []>} : vector<8x8xbf16>, vector<8x8xbf16>, vector<8x8xf32> -> vector<8x8xf32>
    %cst_12 = arith.constant 0.000000e+00 : f32
    %31 = vector.broadcast %cst_12 : f32 to vector<8x8xf32>
    %32 = arith.cmpf ogt, %30, %31 : vector<8x8xf32>
    %33 = math.exp %30 : vector<8x8xf32>
    %cst_13 = arith.constant 1.000000e+00 : f32
    %34 = vector.broadcast %cst_13 : f32 to vector<8x8xf32>
    %35 = arith.subf %33, %34 : vector<8x8xf32>
    %36 = arith.select %32, %30, %35 : vector<8x8xi1>, vector<8x8xf32>
    %cst_14 = arith.constant 0.000000e+00 : f32
    %37 = vector.broadcast %cst_14 : f32 to vector<8x8xf32>
    %38 = arith.cmpf ogt, %36, %37 : vector<8x8xf32>
    %39 = math.exp %36 : vector<8x8xf32>
    %cst_15 = arith.constant 1.000000e+00 : f32
    %40 = vector.broadcast %cst_15 : f32 to vector<8x8xf32>
    %41 = arith.subf %39, %40 : vector<8x8xf32>
    %42 = arith.select %38, %36, %41 : vector<8x8xi1>, vector<8x8xf32>
    %43 = arith.truncf %27 : vector<8x8xf32> to vector<8x8xbf16>
    %c0_16 = arith.constant 0 : index
    %c0_17 = arith.constant 0 : index
    %c0_18 = arith.constant 0 : index
    %44 = vector.load %arg6[%c0_16, %c0_17, %c0_18] : memref<4x8x8xbf16, #tpu.memory_space<vmem>>, vector<1x8x8xbf16>
    %45 = vector.shape_cast %44 : vector<1x8x8xbf16> to vector<8x8xbf16>
    %46 = vector.shape_cast %43 : vector<8x8xbf16> to vector<1x8x8xbf16>
    tpu.vector_store %arg6[%c0_16, %c0_17, %c0_18], %46 {strides = array<i32>} : memref<4x8x8xbf16, #tpu.memory_space<vmem>>, vector<1x8x8xbf16>,
    %47 = vector.extract_strided_slice %4 {offsets = [0, 1], sizes = [8, 1], strides = [1, 1]} : vector<8x4xf32> to vector<8x1xf32>
    %48 = vector.extract_strided_slice %5 {offsets = [1, 0], sizes = [1, 8], strides = [1, 1]} : vector<4x8xf32> to vector<1x8xf32>
    %49 = vector.broadcast %47 : vector<8x1xf32> to vector<8x8xf32>
    %50 = vector.broadcast %48 : vector<1x8xf32> to vector<8x8xf32>
    %51 = arith.addf %49, %50 : vector<8x8xf32>
    %cst_19 = arith.constant 0.000000e+00 : f32
    %52 = vector.broadcast %cst_19 : f32 to vector<8x8xf32>
    %53 = arith.cmpf ogt, %51, %52 : vector<8x8xf32>
    %cst_20 = arith.constant 2.000000e-01 : f32
    %54 = vector.broadcast %cst_20 : f32 to vector<8x8xf32>
    %55 = arith.mulf %54, %51 : vector<8x8xf32>
    %56 = arith.select %53, %51, %55 : vector<8x8xi1>, vector<8x8xf32>
    %cst_21 = arith.constant -9.000000e+15 : f32
    %57 = vector.broadcast %cst_21 : f32 to vector<8x8xf32>
    %58 = arith.select %3, %56, %57 : vector<8x8xi1>, vector<8x8xf32>
    %cst_22 = arith.constant dense<0xFF800000> : vector<8xf32>
    %59 = vector.multi_reduction <maximumf>, %58, %cst_22 [1] : vector<8x8xf32> to vector<8xf32>
    %60 = vector.shape_cast %59 : vector<8xf32> to vector<8x1xf32>
    %61 = vector.broadcast %60 : vector<8x1xf32> to vector<8x8xf32>
    %62 = arith.subf %58, %61 : vector<8x8xf32>
    %63 = math.exp %62 : vector<8x8xf32>
    %cst_23 = arith.constant dense<0.000000e+00> : vector<8xf32>
    %64 = vector.multi_reduction <add>, %63, %cst_23 [1] : vector<8x8xf32> to vector<8xf32>
    %65 = vector.shape_cast %64 : vector<8xf32> to vector<8x1xf32>
    %66 = tpu.reciprocal %65 {approx = true} : vector<8x1xf32> -> vector<8x1xf32>
    %67 = vector.broadcast %66 : vector<8x1xf32> to vector<8x8xf32>
    %68 = arith.mulf %63, %67 : vector<8x8xf32>
    %c0_24 = arith.constant 0 : index
    %c8 = arith.constant 8 : index
    %69 = vector.load %arg1[%c0_24, %c8] : memref<8x32xbf16, #tpu.memory_space<vmem>>, vector<8x8xbf16>
    %70 = arith.truncf %68 : vector<8x8xf32> to vector<8x8xbf16>
    %cst_25 = arith.constant dense<0.000000e+00> : vector<8x8xf32>
    %71 = tpu.matmul %70, %69, %cst_25 {dimension_numbers = #tpu.dot_dimension_numbers<[1], [0], [0], [1], [0, 0, 1, 1], [], []>} : vector<8x8xbf16>, vector<8x8xbf16>, vector<8x8xf32> -> vector<8x8xf32>
    %cst_26 = arith.constant 0.000000e+00 : f32
    %72 = vector.broadcast %cst_26 : f32 to vector<8x8xf32>
    %73 = arith.cmpf ogt, %71, %72 : vector<8x8xf32>
    %74 = math.exp %71 : vector<8x8xf32>
    %cst_27 = arith.constant 1.000000e+00 : f32
    %75 = vector.broadcast %cst_27 : f32 to vector<8x8xf32>
    %76 = arith.subf %74, %75 : vector<8x8xf32>
    %77 = arith.select %73, %71, %76 : vector<8x8xi1>, vector<8x8xf32>
    %cst_28 = arith.constant 0.000000e+00 : f32
    %78 = vector.broadcast %cst_28 : f32 to vector<8x8xf32>
    %79 = arith.cmpf ogt, %77, %78 : vector<8x8xf32>
    %80 = math.exp %77 : vector<8x8xf32>
    %cst_29 = arith.constant 1.000000e+00 : f32
    %81 = vector.broadcast %cst_29 : f32 to vector<8x8xf32>
    %82 = arith.subf %80, %81 : vector<8x8xf32>
    %83 = arith.select %79, %77, %82 : vector<8x8xi1>, vector<8x8xf32>
    %84 = arith.truncf %68 : vector<8x8xf32> to vector<8x8xbf16>
    %c1 = arith.constant 1 : index
    %c0_30 = arith.constant 0 : index
    %c0_31 = arith.constant 0 : index
    %85 = vector.load %arg6[%c1, %c0_30, %c0_31] : memref<4x8x8xbf16, #tpu.memory_space<vmem>>, vector<1x8x8xbf16>
    %86 = vector.shape_cast %85 : vector<1x8x8xbf16> to vector<8x8xbf16>
    %87 = vector.shape_cast %84 : vector<8x8xbf16> to vector<1x8x8xbf16>
    tpu.vector_store %arg6[%c1, %c0_30, %c0_31], %87 {strides = array<i32>} : memref<4x8x8xbf16, #tpu.memory_space<vmem>>, vector<1x8x8xbf16>,
    %88 = vector.extract_strided_slice %4 {offsets = [0, 2], sizes = [8, 1], strides = [1, 1]} : vector<8x4xf32> to vector<8x1xf32>
    %89 = vector.extract_strided_slice %5 {offsets = [2, 0], sizes = [1, 8], strides = [1, 1]} : vector<4x8xf32> to vector<1x8xf32>
    %90 = vector.broadcast %88 : vector<8x1xf32> to vector<8x8xf32>
    %91 = vector.broadcast %89 : vector<1x8xf32> to vector<8x8xf32>
    %92 = arith.addf %90, %91 : vector<8x8xf32>
    %cst_32 = arith.constant 0.000000e+00 : f32
    %93 = vector.broadcast %cst_32 : f32 to vector<8x8xf32>
    %94 = arith.cmpf ogt, %92, %93 : vector<8x8xf32>
    %cst_33 = arith.constant 2.000000e-01 : f32
    %95 = vector.broadcast %cst_33 : f32 to vector<8x8xf32>
    %96 = arith.mulf %95, %92 : vector<8x8xf32>
    %97 = arith.select %94, %92, %96 : vector<8x8xi1>, vector<8x8xf32>
    %cst_34 = arith.constant -9.000000e+15 : f32
    %98 = vector.broadcast %cst_34 : f32 to vector<8x8xf32>
    %99 = arith.select %3, %97, %98 : vector<8x8xi1>, vector<8x8xf32>
    %cst_35 = arith.constant dense<0xFF800000> : vector<8xf32>
    %100 = vector.multi_reduction <maximumf>, %99, %cst_35 [1] : vector<8x8xf32> to vector<8xf32>
    %101 = vector.shape_cast %100 : vector<8xf32> to vector<8x1xf32>
    %102 = vector.broadcast %101 : vector<8x1xf32> to vector<8x8xf32>
    %103 = arith.subf %99, %102 : vector<8x8xf32>
    %104 = math.exp %103 : vector<8x8xf32>
    %cst_36 = arith.constant dense<0.000000e+00> : vector<8xf32>
    %105 = vector.multi_reduction <add>, %104, %cst_36 [1] : vector<8x8xf32> to vector<8xf32>
    %106 = vector.shape_cast %105 : vector<8xf32> to vector<8x1xf32>
    %107 = tpu.reciprocal %106 {approx = true} : vector<8x1xf32> -> vector<8x1xf32>
    %108 = vector.broadcast %107 : vector<8x1xf32> to vector<8x8xf32>
    %109 = arith.mulf %104, %108 : vector<8x8xf32>
    %c0_37 = arith.constant 0 : index
    %c16 = arith.constant 16 : index
    %110 = vector.load %arg1[%c0_37, %c16] : memref<8x32xbf16, #tpu.memory_space<vmem>>, vector<8x8xbf16>
    %111 = arith.truncf %109 : vector<8x8xf32> to vector<8x8xbf16>
    %cst_38 = arith.constant dense<0.000000e+00> : vector<8x8xf32>
    %112 = tpu.matmul %111, %110, %cst_38 {dimension_numbers = #tpu.dot_dimension_numbers<[1], [0], [0], [1], [0, 0, 1, 1], [], []>} : vector<8x8xbf16>, vector<8x8xbf16>, vector<8x8xf32> -> vector<8x8xf32>
    %cst_39 = arith.constant 0.000000e+00 : f32
    %113 = vector.broadcast %cst_39 : f32 to vector<8x8xf32>
    %114 = arith.cmpf ogt, %112, %113 : vector<8x8xf32>
    %115 = math.exp %112 : vector<8x8xf32>
    %cst_40 = arith.constant 1.000000e+00 : f32
    %116 = vector.broadcast %cst_40 : f32 to vector<8x8xf32>
    %117 = arith.subf %115, %116 : vector<8x8xf32>
    %118 = arith.select %114, %112, %117 : vector<8x8xi1>, vector<8x8xf32>
    %cst_41 = arith.constant 0.000000e+00 : f32
    %119 = vector.broadcast %cst_41 : f32 to vector<8x8xf32>
    %120 = arith.cmpf ogt, %118, %119 : vector<8x8xf32>
    %121 = math.exp %118 : vector<8x8xf32>
    %cst_42 = arith.constant 1.000000e+00 : f32
    %122 = vector.broadcast %cst_42 : f32 to vector<8x8xf32>
    %123 = arith.subf %121, %122 : vector<8x8xf32>
    %124 = arith.select %120, %118, %123 : vector<8x8xi1>, vector<8x8xf32>
    %125 = arith.truncf %109 : vector<8x8xf32> to vector<8x8xbf16>
    %c2 = arith.constant 2 : index
    %c0_43 = arith.constant 0 : index
    %c0_44 = arith.constant 0 : index
    %126 = vector.load %arg6[%c2, %c0_43, %c0_44] : memref<4x8x8xbf16, #tpu.memory_space<vmem>>, vector<1x8x8xbf16>
    %127 = vector.shape_cast %126 : vector<1x8x8xbf16> to vector<8x8xbf16>
    %128 = vector.shape_cast %125 : vector<8x8xbf16> to vector<1x8x8xbf16>
    tpu.vector_store %arg6[%c2, %c0_43, %c0_44], %128 {strides = array<i32>} : memref<4x8x8xbf16, #tpu.memory_space<vmem>>, vector<1x8x8xbf16>,
    %129 = vector.extract_strided_slice %4 {offsets = [0, 3], sizes = [8, 1], strides = [1, 1]} : vector<8x4xf32> to vector<8x1xf32>
    %130 = vector.extract_strided_slice %5 {offsets = [3, 0], sizes = [1, 8], strides = [1, 1]} : vector<4x8xf32> to vector<1x8xf32>
    %131 = vector.broadcast %129 : vector<8x1xf32> to vector<8x8xf32>
    %132 = vector.broadcast %130 : vector<1x8xf32> to vector<8x8xf32>
    %133 = arith.addf %131, %132 : vector<8x8xf32>
    %cst_45 = arith.constant 0.000000e+00 : f32
    %134 = vector.broadcast %cst_45 : f32 to vector<8x8xf32>
    %135 = arith.cmpf ogt, %133, %134 : vector<8x8xf32>
    %cst_46 = arith.constant 2.000000e-01 : f32
    %136 = vector.broadcast %cst_46 : f32 to vector<8x8xf32>
    %137 = arith.mulf %136, %133 : vector<8x8xf32>
    %138 = arith.select %135, %133, %137 : vector<8x8xi1>, vector<8x8xf32>
    %cst_47 = arith.constant -9.000000e+15 : f32
    %139 = vector.broadcast %cst_47 : f32 to vector<8x8xf32>
    %140 = arith.select %3, %138, %139 : vector<8x8xi1>, vector<8x8xf32>
    %cst_48 = arith.constant dense<0xFF800000> : vector<8xf32>
    %141 = vector.multi_reduction <maximumf>, %140, %cst_48 [1] : vector<8x8xf32> to vector<8xf32>
    %142 = vector.shape_cast %141 : vector<8xf32> to vector<8x1xf32>
    %143 = vector.broadcast %142 : vector<8x1xf32> to vector<8x8xf32>
    %144 = arith.subf %140, %143 : vector<8x8xf32>
    %145 = math.exp %144 : vector<8x8xf32>
    %cst_49 = arith.constant dense<0.000000e+00> : vector<8xf32>
    %146 = vector.multi_reduction <add>, %145, %cst_49 [1] : vector<8x8xf32> to vector<8xf32>
    %147 = vector.shape_cast %146 : vector<8xf32> to vector<8x1xf32>
    %148 = tpu.reciprocal %147 {approx = true} : vector<8x1xf32> -> vector<8x1xf32>
    %149 = vector.broadcast %148 : vector<8x1xf32> to vector<8x8xf32>
    %150 = arith.mulf %145, %149 : vector<8x8xf32>
    %c0_50 = arith.constant 0 : index
    %c24 = arith.constant 24 : index
    %151 = vector.load %arg1[%c0_50, %c24] : memref<8x32xbf16, #tpu.memory_space<vmem>>, vector<8x8xbf16>
    %152 = arith.truncf %150 : vector<8x8xf32> to vector<8x8xbf16>
    %cst_51 = arith.constant dense<0.000000e+00> : vector<8x8xf32>
    %153 = tpu.matmul %152, %151, %cst_51 {dimension_numbers = #tpu.dot_dimension_numbers<[1], [0], [0], [1], [0, 0, 1, 1], [], []>} : vector<8x8xbf16>, vector<8x8xbf16>, vector<8x8xf32> -> vector<8x8xf32>
    %cst_52 = arith.constant 0.000000e+00 : f32
    %154 = vector.broadcast %cst_52 : f32 to vector<8x8xf32>
    %155 = arith.cmpf ogt, %153, %154 : vector<8x8xf32>
    %156 = math.exp %153 : vector<8x8xf32>
    %cst_53 = arith.constant 1.000000e+00 : f32
    %157 = vector.broadcast %cst_53 : f32 to vector<8x8xf32>
    %158 = arith.subf %156, %157 : vector<8x8xf32>
    %159 = arith.select %155, %153, %158 : vector<8x8xi1>, vector<8x8xf32>
    %cst_54 = arith.constant 0.000000e+00 : f32
    %160 = vector.broadcast %cst_54 : f32 to vector<8x8xf32>
    %161 = arith.cmpf ogt, %159, %160 : vector<8x8xf32>
    %162 = math.exp %159 : vector<8x8xf32>
    %cst_55 = arith.constant 1.000000e+00 : f32
    %163 = vector.broadcast %cst_55 : f32 to vector<8x8xf32>
    %164 = arith.subf %162, %163 : vector<8x8xf32>
    %165 = arith.select %161, %159, %164 : vector<8x8xi1>, vector<8x8xf32>
    %166 = arith.truncf %150 : vector<8x8xf32> to vector<8x8xbf16>
    %c3 = arith.constant 3 : index
    %c0_56 = arith.constant 0 : index
    %c0_57 = arith.constant 0 : index
    %167 = vector.load %arg6[%c3, %c0_56, %c0_57] : memref<4x8x8xbf16, #tpu.memory_space<vmem>>, vector<1x8x8xbf16>
    %168 = vector.shape_cast %167 : vector<1x8x8xbf16> to vector<8x8xbf16>
    %169 = vector.shape_cast %166 : vector<8x8xbf16> to vector<1x8x8xbf16>
    tpu.vector_store %arg6[%c3, %c0_56, %c0_57], %169 {strides = array<i32>} : memref<4x8x8xbf16, #tpu.memory_space<vmem>>, vector<1x8x8xbf16>,
    %170 = tpu.concatenate %42, %83, %124, %165 in 1 : vector<8x8xf32>, vector<8x8xf32>, vector<8x8xf32>, vector<8x8xf32> -> vector<8x32xf32>
    %c0_58 = arith.constant 0 : index
    %c0_59 = arith.constant 0 : index
    %171 = vector.load %arg5[%c0_58, %c0_59] : memref<8x32xf32, #tpu.memory_space<vmem>>, vector<8x32xf32>
    tpu.vector_store %arg5[%c0_58, %c0_59], %170 {strides = array<i32>} : memref<8x32xf32, #tpu.memory_space<vmem>>, vector<8x32xf32>,
    return
  }
  func.func @transform_0(%arg0: i32) -> (i32, i32) {
    %c0_i32 = arith.constant 0 : i32
    %c0_i32_0 = arith.constant 0 : i32
    %c0_i32_1 = arith.constant 0 : i32
    return %c0_i32, %c0_i32_0 : i32, i32
  }
  func.func @transform_1(%arg0: i32) -> (i32, i32) {
    %c0_i32 = arith.constant 0 : i32
    %c0_i32_0 = arith.constant 0 : i32
    return %arg0, %c0_i32 : i32, i32
  }
  func.func @transform_2(%arg0: i32) -> (i32, i32) {
    %c0_i32 = arith.constant 0 : i32
    %c0_i32_0 = arith.constant 0 : i32
    %c0_i32_1 = arith.constant 0 : i32
    return %c0_i32, %c0_i32_0 : i32, i32
  }
  func.func @transform_3(%arg0: i32) -> (i32, i32) {
    %c0_i32 = arith.constant 0 : i32
    %c0_i32_0 = arith.constant 0 : i32
    return %arg0, %c0_i32 : i32, i32
  }
  func.func @transform_4(%arg0: i32) -> (i32, i32) {
    %c0_i32 = arith.constant 0 : i32
    %c0_i32_0 = arith.constant 0 : i32
    return %arg0, %c0_i32 : i32, i32
  }
  func.func @transform_5(%arg0: i32) -> (i32, i32, i32) {
    %c0_i32 = arith.constant 0 : i32
    %c0_i32_0 = arith.constant 0 : i32
    %c0_i32_1 = arith.constant 0 : i32
    return %c0_i32, %arg0, %c0_i32_0 : i32, i32, i32
  }
}

</mosaic_0001>

<bundles_post_ra>
// kernel: tpu_custom_call.1
= control target key start
LH: loop header
LB: loop body
LE: loop exit
PB: predicated region body
PF: predicated region fallthrough
CT: control target
= control target key end

     0   :  { %11 = vsyncpa [#allocation3], 0  ;;  %v581_v1 = vmov 2   ;;  %v582_v2 = vmov 0   ;;  %s714_s0 = inlined_call_operand.vmem [shape: bf16[8,32], index: 0, kind: input, shape index: {}]   ;;  %s715_s1 = inlined_call_operand.vmem [shape: f32[8,4], index: 1, kind: input, shape index: {}]   ;;  %s716_s2 = inlined_call_operand.vmem [shape: f32[4,8], index: 2, kind: input, shape index: {}]   ;;  %s717_s3 = inlined_call_operand.vmem [shape: s8[8,8], index: 3, kind: input, shape index: {}]   ;;  %s718_s4 = inlined_call_operand.hbm [shape: f32[8,32], index: 4, kind: output, shape index: {0}]   ;;  %s719_s5 = inlined_call_operand.hbm [shape: bf16[4,8,8], index: 5, kind: output, shape index: {1}]  }
   0x1   :  { %v25_v0 = vld [vmem:[%s715_s1] sm:$0xff]  ;;  %495 = vset.pattern.permute.xlu1 %v581_v1  ;;  %493 = vset.pattern.permute.xlu0 %v582_v2 }
   0x2   :  { %204 = vperm.xlu1 %495, %v25_v0   ;;  %29 = vperm.xlu0 %493, %v25_v0  }
   0x3   :  { %12 = vsyncpa [#allocation5], 0  ;;  %v583_v3 = vmov 3   ;;  %v584_v4 = vmov 1   ;;  %v32_v5 = vlaneseq  ;;  %v26_v9 = vld [vmem:[%s716_s2] sm:$0xf] }
   0x4   :  { %v22_v10 = vld [vmem:[%s717_s3] sm:$0x3]  ;;  %vm41_vm2 = vcmask 64512   ;;  %s585_s23 = smov 112   ;;  %vm58_vm6 = vcmask 1043456   ;;  %v586_v60 = vmov 0.0  }
   0x5   :  { %v33_v6 = vshrl.u32 %v32_v5, 7  ;;  %v23_v15 = vunpack.c.0.s8 %v22_v10  ;;  %v498_v58 = vld [vmem:[%s714_s0] ss:$0 sps:$4 sm:$0xff]   ;;  %453 = vmatprep.subr.bf16.mxu0 %v586_v60  ;;  %459 = vmatprep.subr.bf16.mxu1 %v586_v60  ;;  %vm587_vm7 = vmmov 0   ;;  %s588_s28 = smov 120   ;;  %s589_s6 = smov 104  }
   0x6   :  { %496 = vset.pattern.permute.xlu1 %v583_v3  ;;  %494 = vset.pattern.permute.xlu0 %v584_v4  ;;  %v53_v59 = vld [vmem:[%s714_s0] sm:$0xf]  ;;  %vm112_vm8 = vcmask 60416   ;;  %s591_s7 = smov 16   ;;  %s592_s8 = smov [#allocation4]  }
   0x7   :  { %293 = vperm.xlu1 %496, %v25_v0   ;;  %115 = vperm.xlu0 %494, %v25_v0   ;;  %v34_v7 = vsub.s32 0, %v33_v6  ;;  %v209_v8 = vsub.s32 2, %v33_v6  ;;  %v298_v13 = vsub.s32 3, %v33_v6  ;;  %v120_v14 = vsub.s32 1, %v33_v6  ;;  %v499_v62 = vld [vmem:[%s714_s0] ss:$0 sps:$4 sm:$0xff]  }
   0x8   :  { %vm636_vm0 = vcmp.gt.s32.totalorder %v23_v15, 0  ;;  %v60_v61 = vsel %vm58_vm6, %v53_v59, 0  ;;  %455 = vmatprep.mubr.msk.bf16.mxu0 %vm587_vm7, %v586_v60  ;;  %461 = vmatprep.mubr.msk.bf16.mxu1 %vm587_vm7, %v586_v60  ;;  %v500_v4 = vld [vmem:[%s714_s0] ss:$0 sps:$4 sm:$0xff]   ;;  %s590_s0 = smov 8   ;;  %s415_s9 = sshll.u32 %s592_s8, 4  ;;  %s416_s9 = int_to_ptr.vmem [resolvable:$true] %s415_s9 }
   0x9   :  { %v35_v11 = vrot.slane %v26_v9, %v34_v7  ;;  %v210_v12 = vrot.slane %v26_v9, %v209_v8  ;;  %v299_v20 = vrot.slane %v26_v9, %v298_v13  ;;  %v121_v21 = vrot.slane %v26_v9, %v120_v14  ;;  %454 = vmatpush3.bf16.msra.mxu0 %v60_v61  ;;  %s533_s10 = scalar_lea.vmem %s416_s9, 256  ;;  %p538_p1 = scmp.lt.s32.totalorder %s416_s9, %s416_s9 }
   0xa   :  { %465 = vmatprep.subr.bf16.mxu0 %v586_v60  ;;  %p534_p0 = scmp.ne.s32.totalorder %s416_s9, %s533_s10  ;;  %p539_p2 = scmp.lt.s32.totalorder %s533_s10, %s533_s10 }
   0xb   :  { %497 = vset.pattern.permute.xlu0 %v583_v3 }
   0xc   :  { %p540_p3 = por %p539_p2, %p538_p1 }
   0xe   :  { %p541_p4 = pnand %p540_p3, %p534_p0 }
  0x81   :  { %v30_v16 = vpop.permute.xlu0 %29  ;;  %v205_v17 = vpop.permute.xlu1 %204 }
  0x82   :  { %v36_v18 = vadd.f32 %v35_v11, %v30_v16  ;;  %v211_v19 = vadd.f32 %v210_v12, %v205_v17 }
  0x84   :  { %v38_v22 = vmul.f32 0.2, %v36_v18  ;;  %v213_v23 = vmul.f32 0.2, %v211_v19  ;;  %vm37_vm1 = vcmp.gt.f32.partialorder %v36_v18, 0.0  ;;  %vm212_vm3 = vcmp.gt.f32.partialorder %v211_v19, 0.0 }
  0x86   :  { %v294_v25 = vpop.permute.xlu1 %293  ;;  %v116_v26 = vpop.permute.xlu0 %115  ;;  %v39_v27 = vsel %vm37_vm1, %v36_v18, %v38_v22  ;;  %v214_v32 = vsel %vm212_vm3, %v211_v19, %v213_v23 }
  0x87   :  { %v300_v28 = vadd.f32 %v299_v20, %v294_v25  ;;  %v122_v29 = vadd.f32 %v121_v21, %v116_v26  ;;  %v40_v30 = vsel %vm636_vm0, %v39_v27, -9e+15  ;;  %v215_v39 = vsel %vm636_vm0, %v214_v32, -9e+15 }
  0x88   :  { %v42_v31 = vsel %vm41_vm2, %v40_v30, -inf  ;;  %v216_v42 = vsel %vm41_vm2, %v215_v39, -inf }
  0x89   :  { %v302_v33 = vmul.f32 0.2, %v300_v28  ;;  %v124_v34 = vmul.f32 0.2, %v122_v29  ;;  %43 = vmax.xlane.f32.xlu1 %v42_v31  ;;  %vm123_vm4 = vcmp.gt.f32.partialorder %v122_v29, 0.0  ;;  %vm301_vm5 = vcmp.gt.f32.partialorder %v300_v28, 0.0 }
  0x8b   :  { %v125_v35 = vsel %vm123_vm4, %v122_v29, %v124_v34  ;;  %v303_v36 = vsel %vm301_vm5, %v300_v28, %v302_v33 }
  0x8c   :  { %v126_v37 = vsel %vm636_vm0, %v125_v35, -9e+15  ;;  %v304_v38 = vsel %vm636_vm0, %v303_v36, -9e+15 }
  0x8d   :  { %v127_v40 = vsel %vm41_vm2, %v126_v37, -inf  ;;  %v305_v41 = vsel %vm41_vm2, %v304_v38, -inf }
  0x8e   :  { %128 = vmax.xlane.f32.xlu0 %v127_v40  ;;  %306 = vmax.xlane.f32.xlu1 %v305_v41 }
  0x92   :  { %217 = vmax.xlane.f32.xlu0 %v216_v42 }
 0x116   :  { %v44_v43 = vpop.xlane.xlu1 %43 }
 0x117   :  { %v45_v44 = vsub.f32 %v40_v30, %v44_v43 }
 0x119   :  { %v46_v45 = vmul.f32 1.442695, %v45_v44 }
 0x11b   :  { %501 = vpow2.f32 %v46_v45  ;;  %v129_v46 = vpop.xlane.xlu0 %128  ;;  %v307_v63 = vpop.xlane.xlu1 %306 }
 0x11c   :  { %v130_v47 = vsub.f32 %v126_v37, %v129_v46  ;;  %v308_v0 = vsub.f32 %v304_v38, %v307_v63 }
 0x11e   :  { %v131_v48 = vmul.f32 1.442695, %v130_v47  ;;  %v309_v1 = vmul.f32 1.442695, %v308_v0 }
 0x11f   :  { %v218_v49 = vpop.xlane.xlu0 %217 }
 0x120   :  { %503 = vpow2.f32 %v131_v48  ;;  %v219_v50 = vsub.f32 %v215_v39, %v218_v49 }
 0x122   :  { %v220_v51 = vmul.f32 1.442695, %v219_v50 }
 0x124   :  { %505 = vpow2.f32 %v220_v51 }
 0x125   :  { %v502_v52 = vpop.eup %501  ;;  %507 = vpow2.f32 %v309_v1 }
 0x126   :  { %v48_v53 = vsel %vm41_vm2, %v502_v52, 0.0 }
 0x127   :  { %49 = vadd.xlane.f32.xlu0 %v48_v53 }
 0x12a   :  { %v504_v54 = vpop.eup %503 }
 0x12b   :  { %v133_v55 = vsel %vm41_vm2, %v504_v54, 0.0 }
 0x12c   :  { %134 = vadd.xlane.f32.xlu1 %v133_v55 }
 0x12e   :  { %v506_v56 = vpop.eup %505 }
 0x12f   :  { %v222_v57 = vsel %vm41_vm2, %v506_v56, 0.0  ;;  %v508_v2 = vpop.eup %507 }
 0x130   :  { %223 = vadd.xlane.f32.xlu0 %v222_v57  ;;  %v311_v3 = vsel %vm41_vm2, %v508_v2, 0.0 }
 0x13d   :  { %232 = vrot.lane.b32.xlu1 %v498_v58, %s585_s23 }
 0x146   :  { %143 = vrot.lane.b32.xlu0 %v499_v62, %s588_s28 }
 0x161   :  { %312 = vadd.xlane.f32.xlu1 %v311_v3 }
 0x172   :  { %321 = vrot.lane.b32.xlu1 %v500_v4, %s589_s6 }
 0x1b4   :  { %v50_v5 = vpop.xlane.xlu0 %49 }
 0x1b5   :  { %509 = vrcp.f32 %v50_v5 }
 0x1b9   :  { %v135_v6 = vpop.xlane.xlu1 %134 }
 0x1ba   :  { %511 = vrcp.f32 %v135_v6 }
 0x1bd   :  { %v224_v7 = vpop.xlane.xlu0 %223  ;;  %v233_v10 = vpop.permute.xlu1 %232 }
 0x1be   :  { %513 = vrcp.f32 %v224_v7  ;;  %v238_v15 = vsel %vm58_vm6, %v233_v10, 0 }
 0x1bf   :  { %v510_v8 = vpop.eup %509 }
 0x1c0   :  { %v52_v9 = vmul.f32 %v510_v8, %v502_v52 }
 0x1c1   :  { %v144_v11 = vpop.permute.xlu0 %143 }
 0x1c2   :  { %v54_v12 = vpack.c.bf16 %v52_v9, %v52_v9  ;;  %v149_v13 = vsel %vm58_vm6, %v144_v11, 0 }
 0x1c3   :  { %460 = vmatpush3.bf16.msra.mxu1 %v149_v13 }
 0x1c4   :  { %v512_v14 = vpop.eup %511  ;;  %456 = vmatmul.mubr.msk.bf16.vlgmr.msra.gmra.mrb[0].mxu0 %vm41_vm2, %v54_v12  ;;  %113 = vst.msk [vmem:[#allocation4] sm:$0xf] %vm112_vm8, %v54_v12  ;;  %471 = vmatprep.subr.bf16.mxu1 %v586_v60 }
 0x1c5   :  { %466 = vmatpush3.bf16.msra.mxu0 %v238_v15  ;;  %v137_v16 = vmul.f32 %v512_v14, %v504_v54  ;;  %467 = vmatprep.mubr.msk.bf16.mxu0 %vm587_vm7, %v586_v60 }
 0x1c7   :  { %v139_v17 = vpack.c.bf16 %v137_v16, %v137_v16 }
 0x1c8   :  { %v514_v18 = vpop.eup %513 }
 0x1c9   :  { %v226_v19 = vmul.f32 %v514_v18, %v506_v56  ;;  %462 = vmatmul.mubr.msk.bf16.vlgmr.msra.gmra.mrb[0].mxu1 %vm41_vm2, %v139_v17  ;;  %202 = vst.msk [vmem:[#allocation4 + $0x4] sm:$0xf] %vm112_vm8, %v139_v17 }
 0x1ca   :  { %473 = vmatprep.mubr.msk.bf16.mxu1 %vm587_vm7, %v586_v60 }
 0x1cb   :  { %v228_v20 = vpack.c.bf16 %v226_v19, %v226_v19 }
 0x1cd   :  { %468 = vmatmul.mubr.msk.bf16.vlgmr.msra.gmra.mrb[4].mxu0 %vm41_vm2, %v228_v20  ;;  %291 = vst.msk [vmem:[#allocation4 + $0x8] sm:$0xf] %vm112_vm8, %v228_v20 }
 0x1ee   :  { %v313_v21 = vpop.xlane.xlu1 %312 }
 0x1ef   :  { %515 = vrcp.f32 %v313_v21 }
 0x1f2   :  { %v322_v22 = vpop.permute.xlu1 %321 }
 0x1f3   :  { %v327_v23 = vsel %vm58_vm6, %v322_v22, 0 }
 0x1f4   :  { %472 = vmatpush3.bf16.msra.mxu1 %v327_v23 }
 0x1f9   :  { %v516_v24 = vpop.eup %515 }
 0x1fa   :  { %v315_v25 = vmul.f32 %v516_v24, %v508_v2 }
 0x1fc   :  { %v317_v26 = vpack.c.bf16 %v315_v25, %v315_v25 }
 0x1fe   :  { %474 = vmatmul.mubr.msk.bf16.vlgmr.msra.gmra.mrb[4].mxu1 %vm41_vm2, %v317_v26  ;;  %380 = vst.msk [vmem:[#allocation4 + $0xc] sm:$0xf] %vm112_vm8, %v317_v26 }
 0x297   :  { %v684_v27 = vpop.f32.mrb[0].mxu0 }
 0x298   :  { %v457_v28 = vpop.f32.mrb[1].mxu0 }
 0x299   :  { %v99_v29 = vpop.f32.mrb[2].mxu0 }
 0x29a   :  { %v458_v30 = vpop.f32.mrb[3].mxu0 }
 0x29c   :  { %v185_v31 = vpop.f32.mrb[0].mxu1 }
 0x29d   :  { %v192_v32 = vmul.f32 1.442695, %v185_v31  ;;  %v463_v33 = vpop.f32.mrb[1].mxu1  ;;  %vm191_vm9 = vcmp.gt.f32.partialorder %v185_v31, 0.0 }
 0x29e   :  { %v188_v34 = vpop.f32.mrb[2].mxu1 }
 0x29f   :  { %517 = vpow2.f32 %v192_v32  ;;  %v464_v35 = vpop.f32.mrb[3].mxu1 }
 0x2a0   :  { %v274_v36 = vpop.f32.mrb[4].mxu0 }
 0x2a1   :  { %v281_v37 = vmul.f32 1.442695, %v274_v36  ;;  %v469_v38 = vpop.f32.mrb[5].mxu0  ;;  %vm280_vm10 = vcmp.gt.f32.partialorder %v274_v36, 0.0 }
 0x2a2   :  { %v277_v39 = vpop.f32.mrb[6].mxu0 }
 0x2a3   :  { %519 = vpow2.f32 %v281_v37  ;;  %v470_v40 = vpop.f32.mrb[7].mxu0 }
 0x2a9   :  { %v518_v41 = vpop.eup %517 }
 0x2aa   :  { %v435_v42 = vadd.f32 -1.0, %v518_v41 }
 0x2ac   :  { %v195_v43 = vsel %vm191_vm9, %v185_v31, %v435_v42 }
 0x2ad   :  { %v520_v44 = vpop.eup %519  ;;  %v197_v45 = vmul.f32 1.442695, %v195_v43  ;;  %vm196_vm11 = vcmp.gt.f32.partialorder %v195_v43, 0.0 }
 0x2ae   :  { %v439_v46 = vadd.f32 -1.0, %v520_v44 }
 0x2af   :  { %521 = vpow2.f32 %v197_v45 }
 0x2b0   :  { %v284_v47 = vsel %vm280_vm10, %v274_v36, %v439_v46 }
 0x2b1   :  { %v286_v48 = vmul.f32 1.442695, %v284_v47  ;;  %vm285_vm12 = vcmp.gt.f32.partialorder %v284_v47, 0.0 }
 0x2b3   :  { %523 = vpow2.f32 %v286_v48 }
 0x2b9   :  { %v522_v49 = vpop.eup %521 }
 0x2ba   :  { %v436_v50 = vadd.f32 -1.0, %v522_v49 }
 0x2bc   :  { %v200_v51 = vsel %vm196_vm11, %v195_v43, %v436_v50 }
 0x2bd   :  { %v524_v52 = vpop.eup %523  ;;  %382 = vrot.lane.b32.xlu0 %v200_v51, %s590_s0 }
 0x2be   :  { %v440_v53 = vadd.f32 -1.0, %v524_v52 }
 0x2c0   :  { %v289_v54 = vsel %vm285_vm12, %v284_v47, %v440_v53 }
 0x2c1   :  { %386 = vrot.lane.b32.xlu1 %v289_v54, %s591_s7 }
 0x2d1   :  { %v363_v55 = vpop.f32.mrb[4].mxu1 }
 0x2d2   :  { %v370_v56 = vmul.f32 1.442695, %v363_v55  ;;  %v475_v57 = vpop.f32.mrb[5].mxu1  ;;  %vm369_vm13 = vcmp.gt.f32.partialorder %v363_v55, 0.0 }
 0x2d3   :  { %v366_v58 = vpop.f32.mrb[6].mxu1 }
 0x2d4   :  { %525 = vpow2.f32 %v370_v56  ;;  %v476_v59 = vpop.f32.mrb[7].mxu1 }
 0x2de   :  { %v526_v60 = vpop.eup %525 }
 0x2df   :  { %v443_v61 = vadd.f32 -1.0, %v526_v60 }
 0x2e1   :  { %v373_v62 = vsel %vm369_vm13, %v363_v55, %v443_v61 }
 0x2e2   :  { %v375_v63 = vmul.f32 1.442695, %v373_v62 }
 0x2e4   :  { %527 = vpow2.f32 %v375_v63 }
 0x2e5   :  { %544 = shalt.err (!%p541_p4)
}
 0x2e6   :  { %s545_s13 = scalar_lea.hbm %s719_s5, 256 }
 0x2e7   :  { %p546_p5 = scmp.ne.s32.totalorder %s719_s5, %s545_s13  ;;  %p549_p6 = scmp.lt.u32.totalorder %s545_s13, %s719_s5 }
 0x2e9   :  { %p551_p7 = pnand %p549_p6, %p546_p5 }
 0x2eb   :  { %554 = shalt.err (!%p551_p7)
}
 0x2ec   :  { %s593_s18 = smov 64   ;;  %s594_s19 = smov 4   ;;  %vm374_vm14 = vcmp.gt.f32.partialorder %v373_v62, 0.0  ;;  %v103_v3 = vmul.f32 1.442695, %v684_v27  ;;  %vm102_vm15 = vcmp.gt.f32.partialorder %v684_v27, 0.0 }
 0x2ed   :  { %421 = dma.vmem_to_hbm [thread:$0]  %s416_s9, 256, %s719_s5, [#allocation5], %s593_s18, %s593_s18, %s594_s19   ;;  %vm394_vm1 = vcmask 130048   ;;  %vm396_vm3 = vcmask 195584   ;;  %vm398_vm4 = vcmask 261120  }
 0x2ee   :  { %v528_v0 = vpop.eup %527  ;;  %s595_s21 = smov 24   ;;  %529 = vpow2.f32 %v103_v3  ;;  %s596_s5 = smov [#allocation2]  }
 0x2ef   :  { %v444_v1 = vadd.f32 -1.0, %v528_v0  ;;  %s406_s22 = sshll.u32 %s596_s5, 4  ;;  %s407_s22 = int_to_ptr.vmem [resolvable:$true] %s406_s22 }
 0x2f0   :  { %s555_s2 = scalar_lea.vmem %s407_s22, 128  ;;  %p560_p9 = scmp.lt.s32.totalorder %s407_s22, %s407_s22 }
 0x2f1   :  { %v378_v2 = vsel %vm374_vm14, %v373_v62, %v444_v1  ;;  %p556_p8 = scmp.ne.s32.totalorder %s407_s22, %s555_s2  ;;  %p561_p10 = scmp.lt.s32.totalorder %s555_s2, %s555_s2 }
 0x2f2   :  { %390 = vrot.lane.b32.xlu0 %v378_v2, %s595_s21 }
 0x2f3   :  { %p562_p11 = por %p561_p10, %p560_p9 }
 0x2f5   :  { %p563_p12 = pnand %p562_p11, %p556_p8 }
 0x2f8   :  { %v530_v4 = vpop.eup %529 }
 0x2f9   :  { %v431_v5 = vadd.f32 -1.0, %v530_v4 }
 0x2fb   :  { %v106_v6 = vsel %vm102_vm15, %v684_v27, %v431_v5 }
 0x2fc   :  { %v108_v7 = vmul.f32 1.442695, %v106_v6  ;;  %vm107_vm0 = vcmp.gt.f32.partialorder %v106_v6, 0.0 }
 0x2fe   :  { %531 = vpow2.f32 %v108_v7 }
 0x308   :  { %v532_v8 = vpop.eup %531 }
 0x309   :  { %v432_v9 = vadd.f32 -1.0, %v532_v8 }
 0x30b   :  { %v111_v12 = vsel %vm107_vm0, %v106_v6, %v432_v9 }
 0x32f   :  { %v383_v10 = vpop.permute.xlu0 %382 }
 0x330   :  { %v393_v13 = vsel %vm41_vm2, %v111_v12, %v383_v10 }
 0x333   :  { %v387_v11 = vpop.permute.xlu1 %386 }
 0x334   :  { %v395_v14 = vsel %vm394_vm1, %v393_v13, %v387_v11 }
 0x364   :  { %v391_v15 = vpop.permute.xlu0 %390 }
 0x365   :  { %v397_v16 = vsel %vm396_vm3, %v395_v14, %v391_v15 }
 0x366   :  { %399 = vst.msk [vmem:[#allocation2] sm:$0xff] %vm398_vm4, %v397_v16 }
 0x367   :  { %566 = shalt.err (!%p563_p12)
}
 0x368   :  { %s567_s24 = scalar_lea.hbm %s718_s4, 128 }
 0x369   :  { %p568_p13 = scmp.ne.s32.totalorder %s718_s4, %s567_s24  ;;  %p571_p0 = scmp.lt.u32.totalorder %s567_s24, %s718_s4 }
 0x36b   :  { %p573_p1 = pnand %p571_p0, %p568_p13 }
 0x36d   :  { %576 = shalt.err (!%p573_p1)
}
 0x36e   :  { %409 = dma.vmem_to_hbm [thread:$0]  %s407_s22, 128, %s718_s4, [#allocation3]  }
 0x36f   :  { %577 = dma.done.wait [#allocation3], 128  }
 0x370   :  { %578 = vsyncadd [#allocation3], 4294967168 }
 0x371   :  { %579 = dma.done.wait [#allocation5], 256  }
 0x372   :  { %580 = vsyncadd [#allocation5], 4294967040 }
 0x373   :  { %428 = vsyncpa [#allocation3], 1 }
 0x374   :  { %429 = vsyncpa [#allocation5], 1 }

</bundles_post_ra>
